<compile_context>
chip_gen: v5e
topology: v5e:2x2
jax: 0.10.0
libtpu: 0.0.40
codegen_flags: <defaults>
</compile_context>

<pallas_src>
import functools

import jax
import jax.numpy as jnp
from jax import lax
from jax.experimental import pallas as pl
from jax.experimental.pallas import tpu as pltpu

EPS = 1e-5  # nn.BatchNorm1d / nn.InstanceNorm1d default
_VMEM_LIMIT = 32 * 1024 * 1024  # safe on v5e/v6e/v7x


def _stats_kernel(x_ref, sum_ref, sumsq_ref):
    """One-pass sum / sum-of-squares per (B, D), accumulated over T tiles."""
    @pl.when(pl.program_id(0) == 0)
    def _():
        sum_ref[...] = jnp.zeros_like(sum_ref)
        sumsq_ref[...] = jnp.zeros_like(sumsq_ref)

    x = x_ref[...]                                    # (B, D, tT) f32
    sum_ref[...] += jnp.sum(x, axis=2)                # (B, D)
    sumsq_ref[...] += jnp.sum(x * x, axis=2)          # (B, D)


def _apply_kernel(c_ref, w_ref, b_ref, sum_ref, sumsq_ref, x_ref, out_ref,
                  *, norm, inv_n):
    """Fold gamma/beta/mean/var into per-(B,D) scale+shift, apply one FMA pass."""
    d = sum_ref.shape[1]

    # Fused conditional projection: one tiny (B,C)@(C,2D) MXU matmul.
    gb = jnp.dot(c_ref[...], w_ref[...],
                 preferred_element_type=jnp.float32) + b_ref[...]   # (B, 2D)
    gamma = gb[:, :d]                                               # (B, D)
    beta = gb[:, d:]                                                # (B, D)

    s = sum_ref[...]                                                # (B, D)
    sq = sumsq_ref[...]                                             # (B, D)
    if norm == "batch_norm":
        s = jnp.sum(s, axis=0, keepdims=True)                       # (1, D)
        sq = jnp.sum(sq, axis=0, keepdims=True)                     # (1, D)

    mean = s * inv_n
    var = jnp.maximum(sq * inv_n - mean * mean, 0.0)  # guard f32 cancellation
    inv_std = lax.rsqrt(var + EPS)                    # EUP slot

    scale = gamma * inv_std                           # (B, D)
    shift = beta - mean * scale                       # (B, D)

    # Big tensor: exactly one load + FMA + lane-dense store.
    out_ref[...] = x_ref[...] * scale[:, :, None] + shift[:, :, None]


def _pick_t_tile(B, D, Tp, budget_bytes=8 * 1024 * 1024):
    """Largest multiple-of-128 T tile that divides Tp and fits the VMEM budget."""
    per_lane = B * D * 4 * 2 * 2          # f32, double-buffered, x-in + out
    max_t = max(128, (budget_bytes // per_lane) // 128 * 128)
    max_t = min(max_t, 1024, Tp)          # >1024 lanes: diminishing returns
    for cand in range(max_t, 127, -128):
        if Tp % cand == 0:
            return cand
    return 128


def cond_batch_norm(x, c, params, norm="batch_norm", t_tile=None):
    """x: (B, D, T) f32, c: (B, C) f32  ->  (B, D, T) f32."""
    if norm not in ("batch_norm", "instance_norm"):
        # TODO(synk): 'group_norm' uses nn.GroupNorm1d, which torch does not define.
        raise ValueError("unsupported norm: %s" % norm)

    B, D, T = x.shape
    C = c.shape[1]

    # Lane-dense padding: round T up to a multiple of 128 so every store is an
    # unmasked full-lane vst; zero padding does not perturb sum / sumsq.
    Tp = pl.cdiv(T, 128) * 128
    tT = t_tile if t_tile is not None else _pick_t_tile(B, D, Tp)
    assert tT % 128 == 0 and Tp % tT == 0, (Tp, tT)
    n_tiles = Tp // tT
    x_p = jnp.pad(x, ((0, 0), (0, 0), (0, Tp - T))) if Tp != T else x

    # Concatenate gamma/beta projections once -> single matmul in the kernel.
    w_cat = jnp.concatenate([params["wg"], params["wb"]], axis=1)   # (C, 2D)
    b_cat = jnp.concatenate([params["bg"], params["bb"]], axis=1)   # (1, 2D)

    x_spec = pl.BlockSpec((B, D, tT), lambda t: (0, 0, t))
    bd_spec = pl.BlockSpec((B, D), lambda t: (0, 0))

    # ---- Pass 1: per-(B, D) statistics, accumulated over the T grid axis ----
    sums, sumsqs = pl.pallas_call(
        _stats_kernel,
        out_shape=(jax.ShapeDtypeStruct((B, D), jnp.float32),
                   jax.ShapeDtypeStruct((B, D), jnp.float32)),
        grid_spec=pltpu.PrefetchScalarGridSpec(
            num_scalar_prefetch=0,
            grid=(n_tiles,),
            in_specs=[x_spec],
            out_specs=[bd_spec, bd_spec]),
        compiler_params=pltpu.CompilerParams(
            dimension_semantics=("arbitrary",),   # reduction over T tiles
            vmem_limit_bytes=_VMEM_LIMIT),
    )(x_p)

    # ---- Pass 2: folded scale/shift applied with independent T tiles --------
    n_count = (B * T) if norm == "batch_norm" else T
    apply_kernel = functools.partial(_apply_kernel, norm=norm,
                                     inv_n=1.0 / float(n_count))
    out_p = pl.pallas_call(
        apply_kernel,
        out_shape=jax.ShapeDtypeStruct((B, D, Tp), jnp.float32),
        grid_spec=pltpu.PrefetchScalarGridSpec(
            num_scalar_prefetch=0,
            grid=(n_tiles,),
            in_specs=[pl.BlockSpec((B, C), lambda t: (0, 0)),       # c
                      pl.BlockSpec((C, 2 * D), lambda t: (0, 0)),   # W cat
                      pl.BlockSpec((1, 2 * D), lambda t: (0, 0)),   # b cat
                      bd_spec,                                      # sum
                      bd_spec,                                      # sumsq
                      x_spec],                                      # x tile
            out_specs=x_spec),
        compiler_params=pltpu.CompilerParams(
            dimension_semantics=("parallel",),    # tiles independent -> megacore
            vmem_limit_bytes=_VMEM_LIMIT),
    )(c, w_cat, b_cat, sums, sumsqs, x_p)

    return out_p[:, :, :T] if Tp != T else out_p


def ref_forward(x, c, params, norm="batch_norm"):
    """Pure-JAX reference replicating CondBatchNorm.forward (training mode)."""
    gamma = c @ params["wg"] + params["bg"]           # (B, D)
    beta = c @ params["wb"] + params["bb"]            # (B, D)
    axes = (0, 2) if norm == "batch_norm" else (2,)
    mean = x.mean(axis=axes, keepdims=True)
    var = ((x - mean) ** 2).mean(axis=axes, keepdims=True)
    net = (x - mean) / jnp.sqrt(var + EPS)
    return gamma[:, :, None] * net + beta[:, :, None]


def init_params(key, c_dim, in_dim):
    # NOTE: reset_parameters() zero-inits both Linear weights (gamma==1,
    # beta==0 regardless of c). We use small random values instead so the
    # conditional path is actually exercised; forward semantics are identical
    # for any parameter values.
    k0, k1, k2, k3 = jax.random.split(key, 4)
    s = 0.1
    return {
        "wg": jax.random.normal(k0, (c_dim, in_dim), jnp.float32) * s,  # gamma.weight^T
        "bg": jax.random.normal(k1, (1, in_dim), jnp.float32) * s,      # gamma.bias
        "wb": jax.random.normal(k2, (c_dim, in_dim), jnp.float32) * s,  # beta.weight^T
        "bb": jax.random.normal(k3, (1, in_dim), jnp.float32) * s,      # beta.bias
    }


if __name__ == "__main__":
    B, C_DIM, IN_DIM, T = 2, 8, 32, 16   # batch, c_dim, in_dim (channels), length

    key = jax.random.PRNGKey(0)
    kx, kc, kw = jax.random.split(key, 3)
    x = jax.random.normal(kx, (B, IN_DIM, T), jnp.float32)
    c = jax.random.normal(kc, (B, C_DIM), jnp.float32)
    params = init_params(kw, C_DIM, IN_DIM)

    # batch_norm path
    out = jax.block_until_ready(cond_batch_norm(x, c, params, norm="batch_norm"))
    ref = ref_forward(x, c, params, norm="batch_norm")
    assert out.shape == (B, IN_DIM, T), out.shape
    assert jnp.allclose(out, ref, atol=1e-4, rtol=1e-4), (
        float(jnp.abs(out - ref).max()))

    # instance_norm path
    out_in = jax.block_until_ready(cond_batch_norm(x, c, params, norm="instance_norm"))
    ref_in = ref_forward(x, c, params, norm="instance_norm")
    assert jnp.allclose(out_in, ref_in, atol=1e-4, rtol=1e-4), (
        float(jnp.abs(out_in - ref_in).max()))

    # Multi-tile path: T not a multiple of 128, forced 128-lane tiles so the
    # stats accumulation over a >1 grid and the parallel apply are exercised.
    T2 = 300
    x2 = jax.random.normal(jax.random.fold_in(kx, 1), (B, IN_DIM, T2), jnp.float32)
    out2 = jax.block_until_ready(
        cond_batch_norm(x2, c, params, norm="batch_norm", t_tile=128))
    ref2 = ref_forward(x2, c, params, norm="batch_norm")
    assert out2.shape == (B, IN_DIM, T2)
    assert jnp.allclose(out2, ref2, atol=1e-4, rtol=1e-4), (
        float(jnp.abs(out2 - ref2).max()))

    print("KERNEL_OK")
</pallas_src>

<mosaic_0001>
module attributes {stable_mosaic.version = 11 : i64} {
  func.func @_stats_kernel(%arg0: i32, %arg1: memref<2x32x128xf32, #tpu.memory_space<vmem>>, %arg2: memref<2x32xf32, #tpu.memory_space<vmem>>, %arg3: memref<2x32xf32, #tpu.memory_space<vmem>>) attributes {dimension_semantics = [#tpu.dimension_semantics<arbitrary>], iteration_bounds = array<i64: 1>, scalar_prefetch = 0 : i64, scratch_operands = 0 : i64, tpu.core_type = #tpu.core_type<tc>, window_params = [{transform_indices = @transform_0, window_bounds = array<i64: 2, 32, 128>}, {pipeline_mode = #tpu.pipeline_mode<synchronous>, transform_indices = @transform_1, window_bounds = array<i64: 2, 32>}, {pipeline_mode = #tpu.pipeline_mode<synchronous>, transform_indices = @transform_2, window_bounds = array<i64: 2, 32>}]} {
    %c0_i32 = arith.constant 0 : i32
    %0 = arith.cmpi eq, %arg0, %c0_i32 : i32
    %1 = arith.extui %0 : i1 to i32
    %c0_i32_0 = arith.constant 0 : i32
    %2 = arith.cmpi ne, %1, %c0_i32_0 : i32
    scf.if %2 {
      %cst_12 = arith.constant 0.000000e+00 : f32
      %13 = vector.broadcast %cst_12 : f32 to vector<2x32xf32>
      %c0_13 = arith.constant 0 : index
      %c0_14 = arith.constant 0 : index
      %14 = vector.load %arg2[%c0_13, %c0_14] : memref<2x32xf32, #tpu.memory_space<vmem>>, vector<2x32xf32>
      tpu.vector_store %arg2[%c0_13, %c0_14], %13 {strides = array<i32>} : memref<2x32xf32, #tpu.memory_space<vmem>>, vector<2x32xf32>,
      %cst_15 = arith.constant 0.000000e+00 : f32
      %15 = vector.broadcast %cst_15 : f32 to vector<2x32xf32>
      %c0_16 = arith.constant 0 : index
      %c0_17 = arith.constant 0 : index
      %16 = vector.load %arg3[%c0_16, %c0_17] : memref<2x32xf32, #tpu.memory_space<vmem>>, vector<2x32xf32>
      tpu.vector_store %arg3[%c0_16, %c0_17], %15 {strides = array<i32>} : memref<2x32xf32, #tpu.memory_space<vmem>>, vector<2x32xf32>,
    } else {
    }
    %c0 = arith.constant 0 : index
    %c0_1 = arith.constant 0 : index
    %c0_2 = arith.constant 0 : index
    %3 = vector.load %arg1[%c0, %c0_1, %c0_2] : memref<2x32x128xf32, #tpu.memory_space<vmem>>, vector<2x32x128xf32>
    %c0_3 = arith.constant 0 : index
    %c0_4 = arith.constant 0 : index
    %4 = vector.load %arg2[%c0_3, %c0_4] : memref<2x32xf32, #tpu.memory_space<vmem>>, vector<2x32xf32>
    %cst = arith.constant dense<0.000000e+00> : vector<2x32xf32>
    %5 = vector.multi_reduction <add>, %3, %cst [2] : vector<2x32x128xf32> to vector<2x32xf32>
    %6 = arith.addf %4, %5 : vector<2x32xf32>
    %c0_5 = arith.constant 0 : index
    %c0_6 = arith.constant 0 : index
    %7 = vector.load %arg2[%c0_5, %c0_6] : memref<2x32xf32, #tpu.memory_space<vmem>>, vector<2x32xf32>
    tpu.vector_store %arg2[%c0_5, %c0_6], %6 {strides = array<i32>} : memref<2x32xf32, #tpu.memory_space<vmem>>, vector<2x32xf32>,
    %c0_7 = arith.constant 0 : index
    %c0_8 = arith.constant 0 : index
    %8 = vector.load %arg3[%c0_7, %c0_8] : memref<2x32xf32, #tpu.memory_space<vmem>>, vector<2x32xf32>
    %9 = arith.mulf %3, %3 : vector<2x32x128xf32>
    %cst_9 = arith.constant dense<0.000000e+00> : vector<2x32xf32>
    %10 = vector.multi_reduction <add>, %9, %cst_9 [2] : vector<2x32x128xf32> to vector<2x32xf32>
    %11 = arith.addf %8, %10 : vector<2x32xf32>
    %c0_10 = arith.constant 0 : index
    %c0_11 = arith.constant 0 : index
    %12 = vector.load %arg3[%c0_10, %c0_11] : memref<2x32xf32, #tpu.memory_space<vmem>>, vector<2x32xf32>
    tpu.vector_store %arg3[%c0_10, %c0_11], %11 {strides = array<i32>} : memref<2x32xf32, #tpu.memory_space<vmem>>, vector<2x32xf32>,
    return
  }
  func.func @transform_0(%arg0: i32) -> (i32, i32, i32) {
    %c0_i32 = arith.constant 0 : i32
    %c0_i32_0 = arith.constant 0 : i32
    %c0_i32_1 = arith.constant 0 : i32
    return %c0_i32, %c0_i32_0, %arg0 : i32, i32, i32
  }
  func.func @transform_1(%arg0: i32) -> (i32, i32) {
    %c0_i32 = arith.constant 0 : i32
    %c0_i32_0 = arith.constant 0 : i32
    %c0_i32_1 = arith.constant 0 : i32
    return %c0_i32, %c0_i32_0 : i32, i32
  }
  func.func @transform_2(%arg0: i32) -> (i32, i32) {
    %c0_i32 = arith.constant 0 : i32
    %c0_i32_0 = arith.constant 0 : i32
    %c0_i32_1 = arith.constant 0 : i32
    return %c0_i32, %c0_i32_0 : i32, i32
  }
}

</mosaic_0001>

<bundles_post_ra>
// kernel: tpu_custom_call.1
= control target key start
LH: loop header
LB: loop body
LE: loop exit
PB: predicated region body
PF: predicated region fallthrough
CT: control target
= control target key end

     0   :  { %8 = vsyncpa [#allocation3], 0  ;;  %s312_s0 = inlined_call_operand.hbm [shape: f32[2,32,128], index: 0, kind: input, shape index: {}]   ;;  %s313_s1 = inlined_call_operand.hbm [shape: f32[2,32], index: 1, kind: output, shape index: {0}]   ;;  %s314_s2 = inlined_call_operand.hbm [shape: f32[2,32], index: 2, kind: output, shape index: {1}]  }
   0x1   :  { %9 = vsyncpa [#allocation4], 0 }
   0x2   :  { %10 = vsyncpa [#allocation7], 0  ;;  %s15_s11 = sshll.u32 %s312_s0, 4  ;;  %s264_s12 = smov [#allocation2]   ;;  %s16_s11 = int_to_ptr.hbm [resolvable:$true] %s15_s11 }
   0x3   :  { %s17_s13 = sshll.u32 %s264_s12, 4  ;;  %s265_s14 = smov 128   ;;  %s18_s13 = int_to_ptr.vmem [resolvable:$true] %s17_s13 }
   0x4   :  { %s266_s15 = smov 8  }
   0x5   :  { %23 = dma.hbm_to_vmem [thread:$0]  %s16_s11, 1024, %s18_s13, [#allocation3], %s265_s14, %s265_s14, %s266_s15  }
   0x6   :  { %258 = dma.done.wait [#allocation3], 1024  }
   0x7   :  { %259 = vsyncadd [#allocation3], 4294966272  ;;  %v39_v0 = vld [vmem:[#allocation2 + $0x20] sm:$0xff]  ;;  %v36_v3 = vld [vmem:[#allocation2 + $0x8] sm:$0xff]  ;;  %vm32_vm0 = vcmask 254976   ;;  %v267_v16 = vmov 0.0   ;;  %v68_v26 = vlaneseq }
   0x8   :  { %v35_v1 = vld [vmem:[#allocation2] sm:$0xff]  ;;  %52 = vadd.xlane.f32.xlu1 %v39_v0  ;;  %v40_v4 = vld [vmem:[#allocation2 + $0x28] sm:$0xff]  ;;  %v98_v5 = vmul.f32 %v36_v3, %v36_v3  ;;  %v101_v7 = vmul.f32 %v39_v0, %v39_v0  ;;  %v37_v8 = vld [vmem:[#allocation2 + $0x10] sm:$0xff]  ;;  %33 = vst.msk [vmem:[#allocation5] sm:$0x3] %vm32_vm0, %v267_v16  ;;  %vm73_vm1 = vcmask 130112  }
   0x9   :  { %44 = vadd.xlane.f32.xlu0 %v35_v1  ;;  %v97_v2 = vmul.f32 %v35_v1, %v35_v1  ;;  %v102_v6 = vmul.f32 %v40_v4, %v40_v4  ;;  %v41_v9 = vld [vmem:[#allocation2 + $0x30] sm:$0xff]  ;;  %v99_v10 = vmul.f32 %v37_v8, %v37_v8  ;;  %v38_v12 = vld [vmem:[#allocation2 + $0x18] sm:$0xff]  ;;  %34 = vst.msk [vmem:[#allocation6] sm:$0x3] %vm32_vm0, %v267_v16  ;;  %v69_v27 = vand.u32 127, %v68_v26  ;;  %s268_s0 = smov [#allocation5]  }
   0xa   :  { %v103_v11 = vmul.f32 %v41_v9, %v41_v9  ;;  %v42_v13 = vld [vmem:[#allocation2 + $0x38] sm:$0xff]  ;;  %v100_v14 = vmul.f32 %v38_v12, %v38_v12  ;;  %vm77_vm2 = vcmask 195712   ;;  %vm81_vm3 = vcmask 261312   ;;  %s152_s16 = sshll.u32 %s268_s0, 4  ;;  %s154_s19 = sshll.u32 %s313_s1, 4  ;;  %s153_s16 = int_to_ptr.vmem [resolvable:$true] %s152_s16  ;;  %s155_s19 = int_to_ptr.hbm [resolvable:$true] %s154_s19 }
   0xb   :  { %105 = vadd.xlane.f32.xlu2 %v97_v2  ;;  %v104_v15 = vmul.f32 %v42_v13, %v42_v13  ;;  %v71_v30 = vadd.s32 4294967288, %v69_v27  ;;  %v75_v31 = vadd.s32 4294967280, %v69_v27  ;;  %v79_v36 = vadd.s32 4294967272, %v69_v27  ;;  %s269_s1 = smov [#allocation6]   ;;  %s165_s23 = sshll.u32 %s314_s2, 4  ;;  %s166_s23 = int_to_ptr.hbm [resolvable:$true] %s165_s23 }
   0xc   :  { %vm90_vm4 = vcmask 1041409   ;;  %s163_s20 = sshll.u32 %s269_s1, 4  ;;  %s164_s20 = int_to_ptr.vmem [resolvable:$true] %s163_s20 }
   0xf   :  { %v43_v48 = vld [vmem:[#allocation5] sm:$0x3] }
  0x10   :  { %54 = vadd.xlane.f32.xlu1 %v40_v4 }
  0x11   :  { %46 = vadd.xlane.f32.xlu0 %v36_v3  ;;  %v96_v3 = vld [vmem:[#allocation6] sm:$0x3] }
  0x13   :  { %107 = vadd.xlane.f32.xlu2 %v98_v5 }
  0x18   :  { %115 = vadd.xlane.f32.xlu1 %v102_v6 }
  0x19   :  { %113 = vadd.xlane.f32.xlu0 %v101_v7 }
  0x1b   :  { %48 = vadd.xlane.f32.xlu2 %v37_v8 }
  0x20   :  { %109 = vadd.xlane.f32.xlu1 %v99_v10 }
  0x21   :  { %56 = vadd.xlane.f32.xlu0 %v41_v9 }
  0x23   :  { %117 = vadd.xlane.f32.xlu2 %v103_v11 }
  0x28   :  { %58 = vadd.xlane.f32.xlu1 %v42_v13 }
  0x29   :  { %50 = vadd.xlane.f32.xlu0 %v38_v12 }
  0x2b   :  { %111 = vadd.xlane.f32.xlu2 %v100_v14 }
  0x31   :  { %119 = vadd.xlane.f32.xlu0 %v104_v15 }
  0x7b   :  { %v53_v17 = vpop.xlane.xlu1 %52 }
  0x7c   :  { %v45_v18 = vpop.xlane.xlu0 %44  ;;  %v83_v33 = vperm.slane %v53_v17, %v69_v27 }
  0x7d   :  { %v70_v39 = vperm.slane %v45_v18, %v69_v27 }
  0x7e   :  { %v106_v19 = vpop.xlane.xlu2 %105 }
  0x7f   :  { %v129_v59 = vperm.slane %v106_v19, %v69_v27 }
  0x83   :  { %v55_v20 = vpop.xlane.xlu1 %54 }
  0x84   :  { %v47_v21 = vpop.xlane.xlu0 %46  ;;  %v84_v34 = vperm.slane %v55_v20, %v71_v30 }
  0x85   :  { %v72_v35 = vperm.slane %v47_v21, %v71_v30 }
  0x86   :  { %v108_v22 = vpop.xlane.xlu2 %107  ;;  %v85_v42 = vsel %vm73_vm1, %v84_v34, %v83_v33 }
  0x87   :  { %v74_v43 = vsel %vm73_vm1, %v72_v35, %v70_v39  ;;  %v130_v53 = vperm.slane %v108_v22, %v71_v30 }
  0x89   :  { %v131_v62 = vsel %vm73_vm1, %v130_v53, %v129_v59 }
  0x8b   :  { %v116_v23 = vpop.xlane.xlu1 %115 }
  0x8c   :  { %v114_v24 = vpop.xlane.xlu0 %113  ;;  %v137_v54 = vperm.slane %v116_v23, %v71_v30 }
  0x8d   :  { %v136_v55 = vperm.slane %v114_v24, %v69_v27 }
  0x8e   :  { %v49_v25 = vpop.xlane.xlu2 %48 }
  0x8f   :  { %v76_v37 = vperm.slane %v49_v25, %v75_v31  ;;  %v138_v63 = vsel %vm73_vm1, %v137_v54, %v136_v55 }
  0x91   :  { %v78_v46 = vsel %vm77_vm2, %v76_v37, %v74_v43 }
  0x93   :  { %v110_v28 = vpop.xlane.xlu1 %109 }
  0x94   :  { %v57_v29 = vpop.xlane.xlu0 %56  ;;  %v132_v57 = vperm.slane %v110_v28, %v75_v31 }
  0x95   :  { %v86_v38 = vperm.slane %v57_v29, %v75_v31 }
  0x96   :  { %v118_v32 = vpop.xlane.xlu2 %117  ;;  %v133_v1 = vsel %vm77_vm2, %v132_v57, %v131_v62 }
  0x97   :  { %v87_v47 = vsel %vm77_vm2, %v86_v38, %v85_v42  ;;  %v139_v58 = vperm.slane %v118_v32, %v75_v31 }
  0x99   :  { %v140_v2 = vsel %vm77_vm2, %v139_v58, %v138_v63 }
  0x9b   :  { %v59_v40 = vpop.xlane.xlu1 %58 }
  0x9c   :  { %v51_v41 = vpop.xlane.xlu0 %50  ;;  %v88_v44 = vperm.slane %v59_v40, %v79_v36 }
  0x9d   :  { %v80_v45 = vperm.slane %v51_v41, %v79_v36 }
  0x9e   :  { %v89_v49 = vsel %vm81_vm3, %v88_v44, %v87_v47  ;;  %v112_v52 = vpop.xlane.xlu2 %111 }
  0x9f   :  { %v82_v50 = vsel %vm81_vm3, %v80_v45, %v78_v46  ;;  %v134_v60 = vperm.slane %v112_v52, %v79_v36 }
  0xa0   :  { %v91_v51 = vsel %vm90_vm4, %v89_v49, %v82_v50 }
  0xa1   :  { %v93_v56 = vadd.f32 %v91_v51, %v43_v48  ;;  %v135_v4 = vsel %vm81_vm3, %v134_v60, %v133_v1 }
  0xa3   :  { %95 = vst.msk [vmem:[#allocation5] sm:$0x3] %vm32_vm0, %v93_v56 }
  0xa4   :  { %v120_v61 = vpop.xlane.xlu0 %119  ;;  %157 = dma.vmem_to_hbm [thread:$0]  %s153_s16, 32, %s155_s19, [#allocation4]  }
  0xa5   :  { %v141_v0 = vperm.slane %v120_v61, %v79_v36 }
  0xa7   :  { %v142_v5 = vsel %vm81_vm3, %v141_v0, %v140_v2 }
  0xa8   :  { %v143_v6 = vsel %vm90_vm4, %v142_v5, %v135_v4 }
  0xa9   :  { %v145_v7 = vadd.f32 %v143_v6, %v96_v3 }
  0xab   :  { %146 = vst.msk [vmem:[#allocation6] sm:$0x3] %vm32_vm0, %v145_v7 }
  0xac   :  { %168 = dma.vmem_to_hbm [thread:$0]  %s164_s20, 32, %s166_s23, [#allocation7]  }
  0xad   :  { %260 = dma.done.wait [#allocation4], 32  }
  0xae   :  { %261 = vsyncadd [#allocation4], 4294967264 }
  0xaf   :  { %262 = dma.done.wait [#allocation7], 32  }
  0xb0   :  { %263 = vsyncadd [#allocation7], 4294967264 }
  0xb1   :  { %177 = vsyncpa [#allocation3], 1 }
  0xb2   :  { %178 = vsyncpa [#allocation4], 1 }
  0xb3   :  { %179 = vsyncpa [#allocation7], 1 }

</bundles_post_ra>
